<compile_context>
chip_gen: v5e
topology: v5e:2x2
jax: 0.10.0
libtpu: 0.0.40
codegen_flags: <defaults>
</compile_context>

<pallas_src>
import functools

import jax
import jax.numpy as jnp
from jax.experimental import pallas as pl
from jax.experimental.pallas import tpu as pltpu


def _round_up(v, m):
    return (v + m - 1) // m * m


def _double_matmul_kernel(x_ref, x2_ref, o_ref, tmp_ref, *, use_bf16_mxu):
    # x is resident in VMEM across the whole grid (index_map constant).
    x = x_ref[...]
    if use_bf16_mxu:
        x = x.astype(jnp.bfloat16)
        rhs1 = x2_ref[...].astype(jnp.bfloat16)
    else:
        rhs1 = x2_ref[...]

    # First matmul: tmp[:, j_tile] = x @ x2[:, j_tile]  (kept in VMEM scratch)
    tmp_ref[...] = jnp.dot(x, rhs1, preferred_element_type=jnp.float32)

    rhs2 = tmp_ref[...].astype(jnp.bfloat16) if use_bf16_mxu else tmp_ref[...]
    # Second matmul: out[:, j_tile] = x @ tmp[:, j_tile]
    o_ref[...] = jnp.dot(x, rhs2, preferred_element_type=jnp.float32).astype(
        o_ref.dtype
    )


def double_matmul(x, x2, *, tn=None, use_bf16_mxu=False):
    M, M2 = x.shape
    assert M == M2, "x must be square for x @ (x @ x2) to be valid"
    K, N = x2.shape
    assert K == M

    # Pad to lane/MXU friendly sizes.
    Mp = _round_up(M, 128)
    if tn is None:
        tn = 256 if _round_up(N, 128) >= 256 else 128
    Np = _round_up(N, tn)

    x_p = x if Mp == M else jnp.pad(x, ((0, Mp - M), (0, Mp - M)))
    x2_p = (
        x2
        if (Mp == M and Np == N)
        else jnp.pad(x2, ((0, Mp - M), (0, Np - N)))
    )

    grid = (Np // tn,)

    # VMEM budget: resident x + double-buffered x2/out tiles + tmp scratch.
    bpe = 4
    vmem_needed = bpe * Mp * Mp + bpe * Mp * tn * (2 + 2 + 1)
    # TODO(synk): for Mp large enough that the resident x slab alone blows
    # v7x's 64 MiB VMEM, x must additionally be K-tiled with a pl.when-
    # initialized accumulator (two-pass structure); not implemented here.
    vmem_limit = int(min(max(vmem_needed + (4 << 20), 32 << 20), 64 << 20))

    cost = pl.CostEstimate(
        flops=2 * (2 * Mp * Mp * Np),
        transcendentals=0,
        bytes_accessed=bpe * (Mp * Mp + 2 * Mp * Np),
    )

    kernel = functools.partial(_double_matmul_kernel, use_bf16_mxu=use_bf16_mxu)

    out_p = pl.pallas_call(
        kernel,
        out_shape=jax.ShapeDtypeStruct((Mp, Np), x.dtype),
        grid_spec=pltpu.PrefetchScalarGridSpec(
            num_scalar_prefetch=0,
            grid=grid,
            in_specs=[
                # x: block index constant across the grid -> fetched once,
                # resident in VMEM for both matmuls of every N tile.
                pl.BlockSpec((Mp, Mp), lambda j: (0, 0)),
                # x2 column tile (double-buffered by the pipeline).
                pl.BlockSpec((Mp, tn), lambda j: (0, j)),
            ],
            out_specs=pl.BlockSpec((Mp, tn), lambda j: (0, j)),
            scratch_shapes=[pltpu.VMEM((Mp, tn), jnp.float32)],
        ),
        compiler_params=pltpu.CompilerParams(
            dimension_semantics=("parallel",),
            vmem_limit_bytes=vmem_limit,
        ),
        cost_estimate=cost,
    )(x_p, x2_p)

    if Mp == M and Np == N:
        return out_p
    return out_p[:M, :N]


if __name__ == "__main__":
    key = jax.random.PRNGKey(0)
    k1, k2 = jax.random.split(key)
    # Small demo shapes consistent with the module (x square, x2 matching).
    M, N = 32, 32
    x = jax.random.normal(k1, (M, M), dtype=jnp.float32)
    x2 = jax.random.normal(k2, (M, N), dtype=jnp.float32)

    out = double_matmul(x, x2)
    jax.block_until_ready(out)

    # Reference check (plain JAX, same default matmul precision).
    ref = x @ (x @ x2)
    assert out.shape == ref.shape
    assert jnp.allclose(out, ref, atol=2e-3, rtol=2e-3)
    print("KERNEL_OK")
</pallas_src>

<mosaic_0001>
module attributes {stable_mosaic.version = 11 : i64} {
  func.func @_double_matmul_kernel(%arg0: i32, %arg1: memref<128x128xf32, #tpu.memory_space<vmem>>, %arg2: memref<128x128xf32, #tpu.memory_space<vmem>>, %arg3: memref<128x128xf32, #tpu.memory_space<vmem>>, %arg4: memref<128x128xf32, #tpu.memory_space<vmem>>) attributes {dimension_semantics = [#tpu.dimension_semantics<parallel>], iteration_bounds = array<i64: 1>, scalar_prefetch = 0 : i64, scratch_operands = 1 : i64, tpu.core_type = #tpu.core_type<tc>, window_params = [{pipeline_mode = #tpu.pipeline_mode<synchronous>, transform_indices = @transform_0, window_bounds = array<i64: 128, 128>}, {transform_indices = @transform_1, window_bounds = array<i64: 128, 128>}, {transform_indices = @transform_2, window_bounds = array<i64: 128, 128>}]} {
    %c0 = arith.constant 0 : index
    %c0_0 = arith.constant 0 : index
    %0 = vector.load %arg1[%c0, %c0_0] : memref<128x128xf32, #tpu.memory_space<vmem>>, vector<128x128xf32>
    %c0_1 = arith.constant 0 : index
    %c0_2 = arith.constant 0 : index
    %1 = vector.load %arg2[%c0_1, %c0_2] : memref<128x128xf32, #tpu.memory_space<vmem>>, vector<128x128xf32>
    %cst = arith.constant dense<0.000000e+00> : vector<128x128xf32>
    %2 = tpu.matmul %0, %1, %cst {dimension_numbers = #tpu.dot_dimension_numbers<[1], [0], [0], [1], [0, 0, 1, 1], [], []>} : vector<128x128xf32>, vector<128x128xf32>, vector<128x128xf32> -> vector<128x128xf32>
    %c0_3 = arith.constant 0 : index
    %c0_4 = arith.constant 0 : index
    %3 = vector.load %arg4[%c0_3, %c0_4] : memref<128x128xf32, #tpu.memory_space<vmem>>, vector<128x128xf32>
    tpu.vector_store %arg4[%c0_3, %c0_4], %2 {strides = array<i32>} : memref<128x128xf32, #tpu.memory_space<vmem>>, vector<128x128xf32>,
    %c0_5 = arith.constant 0 : index
    %c0_6 = arith.constant 0 : index
    %4 = vector.load %arg4[%c0_5, %c0_6] : memref<128x128xf32, #tpu.memory_space<vmem>>, vector<128x128xf32>
    %cst_7 = arith.constant dense<0.000000e+00> : vector<128x128xf32>
    %5 = tpu.matmul %0, %4, %cst_7 {dimension_numbers = #tpu.dot_dimension_numbers<[1], [0], [0], [1], [0, 0, 1, 1], [], []>} : vector<128x128xf32>, vector<128x128xf32>, vector<128x128xf32> -> vector<128x128xf32>
    %c0_8 = arith.constant 0 : index
    %c0_9 = arith.constant 0 : index
    %6 = vector.load %arg3[%c0_8, %c0_9] : memref<128x128xf32, #tpu.memory_space<vmem>>, vector<128x128xf32>
    tpu.vector_store %arg3[%c0_8, %c0_9], %5 {strides = array<i32>} : memref<128x128xf32, #tpu.memory_space<vmem>>, vector<128x128xf32>,
    return
  }
  func.func @transform_0(%arg0: i32) -> (i32, i32) {
    %c0_i32 = arith.constant 0 : i32
    %c0_i32_0 = arith.constant 0 : i32
    %c0_i32_1 = arith.constant 0 : i32
    return %c0_i32, %c0_i32_0 : i32, i32
  }
  func.func @transform_1(%arg0: i32) -> (i32, i32) {
    %c0_i32 = arith.constant 0 : i32
    %c0_i32_0 = arith.constant 0 : i32
    return %c0_i32, %arg0 : i32, i32
  }
  func.func @transform_2(%arg0: i32) -> (i32, i32) {
    %c0_i32 = arith.constant 0 : i32
    %c0_i32_0 = arith.constant 0 : i32
    return %c0_i32, %arg0 : i32, i32
  }
}

</mosaic_0001>

<bundles_post_ra>
// kernel: tpu_custom_call.1
= control target key start
LH: loop header
LB: loop body
LE: loop exit
PB: predicated region body
PF: predicated region fallthrough
CT: control target
= control target key end

     0   :  { %7 = vsyncpa [#allocation4], 0  ;;  %s491_s0 = inlined_call_operand.hbm [shape: f32[128,128], index: 0, kind: input, shape index: {}]   ;;  %s492_s1 = inlined_call_operand.hbm [shape: f32[128,128], index: 1, kind: input, shape index: {}]   ;;  %s493_s2 = inlined_call_operand.hbm [shape: f32[128,128], index: 2, kind: output, shape index: {}]  }
   0x1   :  { %8 = vsyncpa [#allocation7], 0 }
   0x2   :  { %9 = vsyncpa [#allocation5], 0  ;;  %s14_s11 = sshll.u32 %s491_s0, 4  ;;  %s389_s12 = smov [#allocation3]   ;;  %s15_s11 = int_to_ptr.hbm [resolvable:$true] %s14_s11 }
   0x3   :  { %s16_s13 = sshll.u32 %s389_s12, 4  ;;  %s27_s16 = sshll.u32 %s492_s1, 4  ;;  %s17_s13 = int_to_ptr.vmem [resolvable:$true] %s16_s13  ;;  %s28_s16 = int_to_ptr.hbm [resolvable:$true] %s27_s16 }
   0x4   :  { %s390_s17 = smov 128   ;;  %s391_s18 = smov 8  }
   0x5   :  { %22 = dma.hbm_to_vmem [thread:$0]  %s15_s11, 2048, %s17_s13, [#allocation4], %s390_s17, %s390_s17, %s391_s18  }
   0x6   :  { %s392_s19 = smov [#allocation6]  }
   0x7   :  { %s29_s20 = sshll.u32 %s392_s19, 4  ;;  %s30_s20 = int_to_ptr.vmem [resolvable:$true] %s29_s20 }
   0x8   :  { %35 = dma.hbm_to_vmem [thread:$0]  %s28_s16, 2048, %s30_s20, [#allocation7], %s390_s17, %s390_s17, %s391_s18  }
   0x9   :  { %383 = dma.done.wait [#allocation4], 2048  }
   0xa   :  { %384 = vsyncadd [#allocation4], 4294965248 }
   0xb   :  { %385 = dma.done.wait [#allocation7], 2048  }
   0xc   :  { %386 = vsyncadd [#allocation7], 4294965248  ;;  %v75_v0 = vld [vmem:[#allocation6 + $0x78] sm:$0xff]  ;;  %v74_v1 = vld [vmem:[#allocation6 + $0x70] sm:$0xff]  ;;  %s393_s0 = smov [#allocation8]   ;;  %s260_s23 = sshll.u32 %s493_s2, 4  ;;  %s261_s23 = int_to_ptr.hbm [resolvable:$true] %s260_s23 }
   0xd   :  { %274 = vmatpush.msra.mxu2 %v75_v0  ;;  %76 = vmatpush.msra.mxu0 %v75_v0  ;;  %v73_v2 = vld [vmem:[#allocation6 + $0x68] sm:$0xff]  ;;  %v72_v3 = vld [vmem:[#allocation6 + $0x60] sm:$0xff]  ;;  %v71_v4 = vld [vmem:[#allocation6 + $0x58] sm:$0xff]  ;;  %s258_s1 = sshll.u32 %s393_s0, 4  ;;  %s259_s1 = int_to_ptr.vmem [resolvable:$true] %s258_s1 }
   0xe   :  { %v70_v5 = vld [vmem:[#allocation6 + $0x50] sm:$0xff]  ;;  %v69_v6 = vld [vmem:[#allocation6 + $0x48] sm:$0xff]  ;;  %v68_v7 = vld [vmem:[#allocation6 + $0x40] sm:$0xff] }
   0xf   :  { %275 = vmatpush.msra.mxu2 %v74_v1  ;;  %77 = vmatpush.msra.mxu0 %v74_v1  ;;  %v67_v8 = vld [vmem:[#allocation6 + $0x38] sm:$0xff]  ;;  %v66_v9 = vld [vmem:[#allocation6 + $0x30] sm:$0xff]  ;;  %v65_v10 = vld [vmem:[#allocation6 + $0x28] sm:$0xff] }
  0x10   :  { %v64_v11 = vld [vmem:[#allocation6 + $0x20] sm:$0xff]  ;;  %v63_v12 = vld [vmem:[#allocation6 + $0x18] sm:$0xff]  ;;  %v62_v13 = vld [vmem:[#allocation6 + $0x10] sm:$0xff] }
  0x11   :  { %276 = vmatpush.msra.mxu2 %v73_v2  ;;  %78 = vmatpush.msra.mxu0 %v73_v2  ;;  %v61_v14 = vld [vmem:[#allocation6 + $0x8] sm:$0xff]  ;;  %v60_v15 = vld [vmem:[#allocation6] sm:$0xff]  ;;  %v433_v20 = vld [vmem:[#allocation3 + $0x50] sm:$0xff] }
  0x12   :  { %v421_v16 = vld [vmem:[#allocation3 + $0x40] sm:$0xff]  ;;  %v427_v18 = vld [vmem:[#allocation3 + $0x48] sm:$0xff]  ;;  %v435_v21 = vld [vmem:[#allocation3 + $0x10] sm:$0xff] }
  0x13   :  { %277 = vmatpush.msra.mxu2 %v72_v3  ;;  %79 = vmatpush.msra.mxu0 %v72_v3  ;;  %v423_v17 = vld [vmem:[#allocation3] sm:$0xff]  ;;  %v429_v19 = vld [vmem:[#allocation3 + $0x8] sm:$0xff]  ;;  %v439_v22 = vld [vmem:[#allocation3 + $0x58] sm:$0xff] }
  0x14   :  { %v441_v23 = vld [vmem:[#allocation3 + $0x18] sm:$0xff]  ;;  %v445_v24 = vld [vmem:[#allocation3 + $0x60] sm:$0xff]  ;;  %v451_v26 = vld [vmem:[#allocation3 + $0x68] sm:$0xff] }
  0x15   :  { %278 = vmatpush.msra.mxu2 %v71_v4  ;;  %80 = vmatpush.msra.mxu0 %v71_v4  ;;  %v447_v25 = vld [vmem:[#allocation3 + $0x20] sm:$0xff]  ;;  %v453_v27 = vld [vmem:[#allocation3 + $0x28] sm:$0xff]  ;;  %v457_v28 = vld [vmem:[#allocation3 + $0x70] sm:$0xff] }
  0x16   :  { %v459_v29 = vld [vmem:[#allocation3 + $0x30] sm:$0xff]  ;;  %v463_v30 = vld [vmem:[#allocation3 + $0x78] sm:$0xff] }
  0x17   :  { %279 = vmatpush.msra.mxu2 %v70_v5  ;;  %81 = vmatpush.msra.mxu0 %v70_v5  ;;  %v465_v31 = vld [vmem:[#allocation3 + $0x38] sm:$0xff] }
  0x19   :  { %280 = vmatpush.msra.mxu2 %v69_v6  ;;  %82 = vmatpush.msra.mxu0 %v69_v6 }
  0x1b   :  { %281 = vmatpush.msra.mxu2 %v68_v7  ;;  %83 = vmatpush.msra.mxu0 %v68_v7 }
  0x1d   :  { %282 = vmatpush.msra.mxu2 %v67_v8  ;;  %84 = vmatpush.msra.mxu0 %v67_v8 }
  0x1f   :  { %283 = vmatpush.msra.mxu2 %v66_v9  ;;  %85 = vmatpush.msra.mxu0 %v66_v9 }
  0x21   :  { %284 = vmatpush.msra.mxu2 %v65_v10  ;;  %86 = vmatpush.msra.mxu0 %v65_v10 }
  0x23   :  { %285 = vmatpush.msra.mxu2 %v64_v11  ;;  %87 = vmatpush.msra.mxu0 %v64_v11 }
  0x25   :  { %286 = vmatpush.msra.mxu2 %v63_v12  ;;  %88 = vmatpush.msra.mxu0 %v63_v12 }
  0x27   :  { %287 = vmatpush.msra.mxu2 %v62_v13  ;;  %89 = vmatpush.msra.mxu0 %v62_v13 }
  0x29   :  { %288 = vmatpush.msra.mxu2 %v61_v14  ;;  %90 = vmatpush.msra.mxu0 %v61_v14 }
  0x2b   :  { %289 = vmatpush.msra.mxu2 %v60_v15  ;;  %91 = vmatpush.msra.mxu0 %v60_v15 }
  0x2c   :  { %116 = vmatmul.f32.vlgmr.msra.gmra.mxu2 %v421_v16  ;;  %92 = vmatmul.f32.vlgmr.msra.gmra.mxu0 %v423_v17 }
  0x34   :  { %119 = vmatmul.f32.gmra.mxu2 %v427_v18  ;;  %95 = vmatmul.f32.gmra.mxu0 %v429_v19 }
  0x3c   :  { %122 = vmatmul.f32.gmra.mxu2 %v433_v20  ;;  %98 = vmatmul.f32.gmra.mxu0 %v435_v21 }
  0x44   :  { %125 = vmatmul.f32.gmra.mxu2 %v439_v22  ;;  %101 = vmatmul.f32.gmra.mxu0 %v441_v23 }
  0x4c   :  { %128 = vmatmul.f32.gmra.mxu2 %v445_v24  ;;  %104 = vmatmul.f32.gmra.mxu0 %v447_v25 }
  0x54   :  { %131 = vmatmul.f32.gmra.mxu2 %v451_v26  ;;  %107 = vmatmul.f32.gmra.mxu0 %v453_v27 }
  0x5c   :  { %134 = vmatmul.f32.gmra.mxu2 %v457_v28  ;;  %110 = vmatmul.f32.gmra.mxu0 %v459_v29 }
  0x64   :  { %137 = vmatmul.f32.gmra.mxu2 %v463_v30  ;;  %113 = vmatmul.f32.gmra.mxu0 %v465_v31 }
  0xa9   :  { %v93_v33 = vpop.f32.mrf.mxu0 }
  0xaf   :  { %v117_v32 = vpop.f32.mrf.mxu2 }
  0xb1   :  { %v96_v35 = vpop.f32.mrf.mxu0 }
  0xb7   :  { %v120_v34 = vpop.f32.mrf.mxu2 }
  0xb9   :  { %v99_v37 = vpop.f32.mrf.mxu0 }
  0xbf   :  { %v123_v36 = vpop.f32.mrf.mxu2 }
  0xc1   :  { %v102_v39 = vpop.f32.mrf.mxu0 }
  0xc7   :  { %v126_v38 = vpop.f32.mrf.mxu2 }
  0xc9   :  { %v105_v42 = vpop.f32.mrf.mxu0 }
  0xcf   :  { %v129_v40 = vpop.f32.mrf.mxu2 }
  0xd1   :  { %v108_v44 = vpop.f32.mrf.mxu0 }
  0xd7   :  { %v132_v41 = vpop.f32.mrf.mxu2 }
  0xd9   :  { %v111_v46 = vpop.f32.mrf.mxu0 }
  0xdf   :  { %v135_v43 = vpop.f32.mrf.mxu2 }
  0xe1   :  { %v114_v47 = vpop.f32.mrf.mxu0 }
  0xe7   :  { %v138_v45 = vpop.f32.mrf.mxu2 }
  0xe8   :  { %173 = vmatpush.msra.mxu1 %v138_v45  ;;  %290 = vmatpush.msra.mxu3 %v138_v45 }
  0xea   :  { %174 = vmatpush.msra.mxu1 %v135_v43  ;;  %291 = vmatpush.msra.mxu3 %v135_v43 }
  0xec   :  { %175 = vmatpush.msra.mxu1 %v132_v41  ;;  %292 = vmatpush.msra.mxu3 %v132_v41 }
  0xee   :  { %176 = vmatpush.msra.mxu1 %v129_v40  ;;  %293 = vmatpush.msra.mxu3 %v129_v40 }
  0xf0   :  { %177 = vmatpush.msra.mxu1 %v126_v38  ;;  %294 = vmatpush.msra.mxu3 %v126_v38 }
  0xf2   :  { %178 = vmatpush.msra.mxu1 %v123_v36  ;;  %295 = vmatpush.msra.mxu3 %v123_v36 }
  0xf4   :  { %179 = vmatpush.msra.mxu1 %v120_v34  ;;  %296 = vmatpush.msra.mxu3 %v120_v34 }
  0xf6   :  { %180 = vmatpush.msra.mxu1 %v117_v32  ;;  %297 = vmatpush.msra.mxu3 %v117_v32 }
  0xf8   :  { %181 = vmatpush.msra.mxu1 %v114_v47  ;;  %298 = vmatpush.msra.mxu3 %v114_v47 }
  0xfa   :  { %182 = vmatpush.msra.mxu1 %v111_v46  ;;  %299 = vmatpush.msra.mxu3 %v111_v46 }
  0xfc   :  { %183 = vmatpush.msra.mxu1 %v108_v44  ;;  %300 = vmatpush.msra.mxu3 %v108_v44 }
  0xfe   :  { %184 = vmatpush.msra.mxu1 %v105_v42  ;;  %301 = vmatpush.msra.mxu3 %v105_v42 }
 0x100   :  { %185 = vmatpush.msra.mxu1 %v102_v39  ;;  %302 = vmatpush.msra.mxu3 %v102_v39 }
 0x102   :  { %186 = vmatpush.msra.mxu1 %v99_v37  ;;  %303 = vmatpush.msra.mxu3 %v99_v37 }
 0x104   :  { %187 = vmatpush.msra.mxu1 %v96_v35  ;;  %304 = vmatpush.msra.mxu3 %v96_v35 }
 0x106   :  { %188 = vmatpush.msra.mxu1 %v93_v33  ;;  %305 = vmatpush.msra.mxu3 %v93_v33 }
 0x107   :  { %213 = vmatmul.f32.vlgmr.msra.gmra.mxu3 %v421_v16  ;;  %189 = vmatmul.f32.vlgmr.msra.gmra.mxu1 %v423_v17 }
 0x10f   :  { %216 = vmatmul.f32.gmra.mxu3 %v427_v18  ;;  %192 = vmatmul.f32.gmra.mxu1 %v429_v19 }
 0x117   :  { %219 = vmatmul.f32.gmra.mxu3 %v433_v20  ;;  %195 = vmatmul.f32.gmra.mxu1 %v435_v21 }
 0x11f   :  { %222 = vmatmul.f32.gmra.mxu3 %v439_v22  ;;  %198 = vmatmul.f32.gmra.mxu1 %v441_v23 }
 0x127   :  { %225 = vmatmul.f32.gmra.mxu3 %v445_v24  ;;  %201 = vmatmul.f32.gmra.mxu1 %v447_v25 }
 0x12f   :  { %228 = vmatmul.f32.gmra.mxu3 %v451_v26  ;;  %204 = vmatmul.f32.gmra.mxu1 %v453_v27 }
 0x137   :  { %231 = vmatmul.f32.gmra.mxu3 %v457_v28  ;;  %207 = vmatmul.f32.gmra.mxu1 %v459_v29 }
 0x13f   :  { %234 = vmatmul.f32.gmra.mxu3 %v463_v30  ;;  %210 = vmatmul.f32.gmra.mxu1 %v465_v31 }
 0x184   :  { %v190_v48 = vpop.f32.mrf.mxu1 }
 0x185   :  { %238 = vst [vmem:[#allocation8] sm:$0xff] %v190_v48 }
 0x18a   :  { %v214_v49 = vpop.f32.mrf.mxu3 }
 0x18b   :  { %246 = vst [vmem:[#allocation8 + $0x40] sm:$0xff] %v214_v49 }
 0x18c   :  { %v193_v50 = vpop.f32.mrf.mxu1 }
 0x18d   :  { %239 = vst [vmem:[#allocation8 + $0x8] sm:$0xff] %v193_v50 }
 0x192   :  { %v217_v51 = vpop.f32.mrf.mxu3 }
 0x193   :  { %247 = vst [vmem:[#allocation8 + $0x48] sm:$0xff] %v217_v51 }
 0x194   :  { %v196_v52 = vpop.f32.mrf.mxu1 }
 0x195   :  { %240 = vst [vmem:[#allocation8 + $0x10] sm:$0xff] %v196_v52 }
 0x19a   :  { %v220_v53 = vpop.f32.mrf.mxu3 }
 0x19b   :  { %248 = vst [vmem:[#allocation8 + $0x50] sm:$0xff] %v220_v53 }
 0x19c   :  { %v199_v54 = vpop.f32.mrf.mxu1 }
 0x19d   :  { %241 = vst [vmem:[#allocation8 + $0x18] sm:$0xff] %v199_v54 }
 0x1a2   :  { %v223_v55 = vpop.f32.mrf.mxu3 }
 0x1a3   :  { %249 = vst [vmem:[#allocation8 + $0x58] sm:$0xff] %v223_v55 }
 0x1a4   :  { %v202_v56 = vpop.f32.mrf.mxu1 }
 0x1a5   :  { %242 = vst [vmem:[#allocation8 + $0x20] sm:$0xff] %v202_v56 }
 0x1aa   :  { %v226_v57 = vpop.f32.mrf.mxu3 }
 0x1ab   :  { %250 = vst [vmem:[#allocation8 + $0x60] sm:$0xff] %v226_v57 }
 0x1ac   :  { %v205_v58 = vpop.f32.mrf.mxu1 }
 0x1ad   :  { %243 = vst [vmem:[#allocation8 + $0x28] sm:$0xff] %v205_v58 }
 0x1b2   :  { %v229_v59 = vpop.f32.mrf.mxu3 }
 0x1b3   :  { %251 = vst [vmem:[#allocation8 + $0x68] sm:$0xff] %v229_v59 }
 0x1b4   :  { %v208_v60 = vpop.f32.mrf.mxu1 }
 0x1b5   :  { %244 = vst [vmem:[#allocation8 + $0x30] sm:$0xff] %v208_v60 }
 0x1ba   :  { %v232_v61 = vpop.f32.mrf.mxu3 }
 0x1bb   :  { %252 = vst [vmem:[#allocation8 + $0x70] sm:$0xff] %v232_v61 }
 0x1bc   :  { %v211_v62 = vpop.f32.mrf.mxu1 }
 0x1bd   :  { %245 = vst [vmem:[#allocation8 + $0x38] sm:$0xff] %v211_v62 }
 0x1c2   :  { %v235_v63 = vpop.f32.mrf.mxu3 }
 0x1c3   :  { %253 = vst [vmem:[#allocation8 + $0x78] sm:$0xff] %v235_v63 }
 0x1c4   :  { %266 = dma.vmem_to_hbm [thread:$0]  %s259_s1, 2048, %s261_s23, [#allocation5], %s390_s17, %s390_s17, %s391_s18  }
 0x1c5   :  { %387 = dma.done.wait [#allocation5], 2048  }
 0x1c6   :  { %388 = vsyncadd [#allocation5], 4294965248 }
 0x1c7   :  { %271 = vsyncpa [#allocation4], 1 }
 0x1c8   :  { %272 = vsyncpa [#allocation7], 1 }
 0x1c9   :  { %273 = vsyncpa [#allocation5], 1 }

</bundles_post_ra>
